<compile_context>
chip_gen: v7x
topology: tpu7x:2x2x1
jax: 0.10.0
libtpu: 0.0.40
codegen_flags: <defaults>
</compile_context>

<pallas_src>
import jax
import jax.numpy as jnp
from jax.experimental import pallas as pl
from jax.experimental.pallas import tpu as pltpu


def _round_up(a, b):
    return (a + b - 1) // b * b


def _sublane_multiple(dtype):
    # Minimum second-minor tile size so packed vregs are full:
    # 8 (f32), 16 (bf16), 32 (int8/fp8).
    return max(8, 32 // jnp.dtype(dtype).itemsize)


def _ffn_kernel(x_ref, w1_ref, b1_ref, w2_ref, b2_ref, o_ref, acc_ref):
    """One (row-tile, hidden-block) step of x @ w1 + b1 -> GELU -> @ w2 + b2."""
    h_idx = pl.program_id(1)

    # First linear for this hidden block: (TM, E_pad) @ (E_pad, TH), f32 acc.
    h = jnp.dot(x_ref[...], w1_ref[...], preferred_element_type=jnp.float32)
    h = h + b1_ref[...]

    # Tanh-approximation GELU in f32 (same formula as the PyTorch module).
    # Rewritten as h*(1 + 0.044715*h*h) inside tanh (one fewer vmul); the
    # leading 0.5 was folded into w2 at prep time (exact: power of two).
    c = jnp.float32(0.7978845608028654)            # sqrt(2 / pi)
    inner = c * h * (1.0 + 0.044715 * h * h)
    g = h * (1.0 + jnp.tanh(inner))
    g = g.astype(w2_ref.dtype)                     # back to MXU dtype (bf16/f32)

    # Second linear partial product: (TM, TH) @ (TH, E_pad), f32 acc.
    partial = jnp.dot(g, w2_ref[...], preferred_element_type=jnp.float32)

    @pl.when(h_idx == 0)
    def _init():
        acc_ref[...] = partial + b2_ref[...]

    @pl.when(h_idx != 0)
    def _accum():
        acc_ref[...] += partial

    @pl.when(h_idx == pl.num_programs(1) - 1)
    def _finalize():
        o_ref[...] = acc_ref[...].astype(o_ref.dtype)


def prepare_ffn_params(w1, b1, w2, b2, *, compute_dtype=jnp.bfloat16, th=512):
    """One-time (init-path) parameter prep: pad, cast, fold GELU's 0.5 into w2.

    Weights are stored (in, out), i.e. the transpose of torch.nn.Linear.weight.
    Zero-padding is exact: padded x columns multiply zero w1 rows, GELU(0)=0,
    and padded w2 rows/columns are zero.
    """
    E, H = w1.shape
    assert w2.shape == (H, E) and b1.shape == (H,) and b2.shape == (E,)

    E_pad = _round_up(E, 128)
    TH = max(128, (int(th) // 128) * 128)          # hidden-block width (lanes)
    TH = min(TH, _round_up(H, 128))
    H_pad = _round_up(H, TH)

    w2_s = w2 * 0.5                                 # exact fold of GELU's 0.5
    if (E_pad, H_pad) != (E, H):
        w1 = jnp.pad(w1, ((0, E_pad - E), (0, H_pad - H)))
        w2_s = jnp.pad(w2_s, ((0, H_pad - H), (0, E_pad - E)))
        b1 = jnp.pad(b1, (0, H_pad - H))
        b2 = jnp.pad(b2, (0, E_pad - E))

    return {
        "w1": w1.astype(compute_dtype),             # (E_pad, H_pad)
        "w2": w2_s.astype(compute_dtype),           # (H_pad, E_pad), pre-scaled by 0.5
        "b1": b1.astype(jnp.float32).reshape(1, H_pad),
        "b2": b2.astype(jnp.float32).reshape(1, E_pad),
        "E": E,
        "H": H,
        "TH": TH,
        "compute_dtype": jnp.dtype(compute_dtype),
    }


def feed_forward(x, params, *, tm=256):
    """x: (batch, seq, E) -> (batch, seq, E) using prepared params."""
    B, S, E = x.shape
    assert E == params["E"], "emb_dim mismatch with prepared params"

    w1, b1, w2, b2 = params["w1"], params["b1"], params["w2"], params["b2"]
    E_pad, H_pad = w1.shape
    TH = params["TH"]
    num_h = H_pad // TH
    compute_dtype = params["compute_dtype"]
    act_isz = compute_dtype.itemsize
    out_dtype = x.dtype
    out_isz = jnp.dtype(out_dtype).itemsize

    # ---- row (M) tiling ------------------------------------------------------
    M = B * S
    sub = _sublane_multiple(compute_dtype)
    tm = max(sub, (int(tm) // sub) * sub)
    M_pad_min = _round_up(M, sub)
    TM = min(tm, M_pad_min)
    if _round_up(M, TM) // TM == 1 and TM >= 2 * sub:
        # The row grid would collapse to one step; split it so both v7x
        # TensorCores get work (no effect on v5e/v6e correctness).
        TM = _round_up(TM // 2, sub)
    M_pad = _round_up(M, TM)
    num_m = M_pad // TM

    # ---- activations: cast to MXU dtype, pad only if needed -----------------
    x2d = x.reshape(M, E)
    if x2d.dtype != compute_dtype:
        x2d = x2d.astype(compute_dtype)
    if (M_pad, E_pad) != (M, E):
        x2d = jnp.pad(x2d, ((0, M_pad - M), (0, E_pad - E)))

    # ---- explicit VMEM budget sized from the working set --------------------
    working_set = (
        2 * TM * E_pad * act_isz            # x row tile, double-buffered
        + 2 * E_pad * TH * act_isz          # w1 block, double-buffered
        + 2 * TH * E_pad * act_isz          # w2 block, double-buffered
        + 2 * 8 * (TH + E_pad) * 4          # biases (sublane-padded)
        + 2 * TM * E_pad * out_isz          # output tile, double-buffered
        + TM * E_pad * 4                    # f32 accumulator scratch
        + 4 * TM * TH * 4                   # f32 GELU temporaries / headroom
    )
    vmem_limit = int(min(max(working_set * 3 // 2 + (4 << 20), 32 << 20), 64 << 20))

    cost = pl.CostEstimate(
        flops=4 * M_pad * E_pad * H_pad,                       # two matmuls
        transcendentals=M_pad * H_pad,                         # tanh per hidden elem
        bytes_accessed=(
            M_pad * E_pad * act_isz                            # x (read once per tile)
            + num_m * (w1.size + w2.size) * act_isz            # streamed weights
            + (b1.size + b2.size) * 4
            + M_pad * E_pad * out_isz                          # output
        ),
    )

    out2d = pl.pallas_call(
        _ffn_kernel,
        out_shape=jax.ShapeDtypeStruct((M_pad, E_pad), out_dtype),
        grid_spec=pltpu.PrefetchScalarGridSpec(
            num_scalar_prefetch=0,
            grid=(num_m, num_h),                               # M outer, H (reduction) inner
            in_specs=[
                # x: block index constant over h -> DMA'd once per row tile.
                pl.BlockSpec((TM, E_pad), lambda i, h: (i, 0)),
                # w1 column-block / b1 slice: streamed over h, double-buffered.
                pl.BlockSpec((E_pad, TH), lambda i, h: (0, h)),
                pl.BlockSpec((1, TH), lambda i, h: (0, h)),
                # w2 row-block: streamed over h.
                pl.BlockSpec((TH, E_pad), lambda i, h: (h, 0)),
                # b2: constant.
                pl.BlockSpec((1, E_pad), lambda i, h: (0, 0)),
            ],
            out_specs=pl.BlockSpec((TM, E_pad), lambda i, h: (i, 0)),
            scratch_shapes=[pltpu.VMEM((TM, E_pad), jnp.float32)],
        ),
        compiler_params=pltpu.CompilerParams(
            dimension_semantics=("parallel", "arbitrary"),
            vmem_limit_bytes=vmem_limit,
        ),
        cost_estimate=cost,
    )(x2d, w1, b1, w2, b2)

    return out2d[:M, :E].reshape(B, S, E)


def _reference(x, w1, b1, w2, b2):
    h = x @ w1 + b1
    g = 0.5 * h * (1.0 + jnp.tanh(jnp.sqrt(2.0 / jnp.pi) * (h + 0.044715 * h ** 3)))
    return g @ w2 + b2


if __name__ == "__main__":
    key = jax.random.PRNGKey(0)

    # ---- config 1: cfg['emb_dim'] = 32 (hidden = 128) -----------------------
    B, S, E = 2, 8, 32
    H = 4 * E
    kx, kw1, kb1, kw2, kb2, key = jax.random.split(key, 6)
    x = jax.random.normal(kx, (B, S, E), dtype=jnp.float32)
    # PyTorch Linear stores (out, in); we store (in, out).
    w1 = jax.random.normal(kw1, (E, H), dtype=jnp.float32) * 0.02
    b1 = jax.random.normal(kb1, (H,), dtype=jnp.float32) * 0.02
    w2 = jax.random.normal(kw2, (H, E), dtype=jnp.float32) * 0.02
    b2 = jax.random.normal(kb2, (E,), dtype=jnp.float32) * 0.02
    ref = _reference(x, w1, b1, w2, b2)

    # Exact (f32 MXU) path — tight tolerance vs reference formula.
    p_f32 = prepare_ffn_params(w1, b1, w2, b2, compute_dtype=jnp.float32)
    out_f32 = jax.block_until_ready(feed_forward(x, p_f32))
    assert out_f32.shape == (B, S, E) and out_f32.dtype == x.dtype
    assert jnp.allclose(out_f32, ref, atol=1e-5, rtol=1e-5), "f32 path mismatch"

    # Default bf16-MXU path (f32 accumulation / GELU / biases) — looser tolerance.
    p_bf16 = prepare_ffn_params(w1, b1, w2, b2, compute_dtype=jnp.bfloat16)
    out_bf16 = jax.block_until_ready(feed_forward(x, p_bf16))
    assert out_bf16.shape == (B, S, E) and out_bf16.dtype == x.dtype
    assert jnp.allclose(out_bf16, ref, atol=2e-2, rtol=2e-2), "bf16 path mismatch"

    # ---- config 2: emb_dim = 64, th=128 -> exercises the H-reduction axis ----
    E2 = 64
    H2 = 4 * E2
    kx, kw1, kb1, kw2, kb2, key = jax.random.split(key, 6)
    x2 = jax.random.normal(kx, (B, S, E2), dtype=jnp.float32)
    w1_2 = jax.random.normal(kw1, (E2, H2), dtype=jnp.float32) * 0.02
    b1_2 = jax.random.normal(kb1, (H2,), dtype=jnp.float32) * 0.02
    w2_2 = jax.random.normal(kw2, (H2, E2), dtype=jnp.float32) * 0.02
    b2_2 = jax.random.normal(kb2, (E2,), dtype=jnp.float32) * 0.02
    p2 = prepare_ffn_params(w1_2, b1_2, w2_2, b2_2, compute_dtype=jnp.float32, th=128)
    out2 = jax.block_until_ready(feed_forward(x2, p2))
    ref2 = _reference(x2, w1_2, b1_2, w2_2, b2_2)
    assert out2.shape == (B, S, E2)
    assert jnp.allclose(out2, ref2, atol=1e-5, rtol=1e-5), "H-tiled path mismatch"

    print("KERNEL_OK")
</pallas_src>

<mosaic_0001>
module attributes {stable_mosaic.version = 11 : i64} {
  func.func @_ffn_kernel(%arg0: i32, %arg1: i32, %arg2: memref<8x128xf32, #tpu.memory_space<vmem>>, %arg3: memref<128x128xf32, #tpu.memory_space<vmem>>, %arg4: memref<1x128xf32, #tpu.memory_space<vmem>>, %arg5: memref<128x128xf32, #tpu.memory_space<vmem>>, %arg6: memref<1x128xf32, #tpu.memory_space<vmem>>, %arg7: memref<8x128xf32, #tpu.memory_space<vmem>>, %arg8: memref<8x128xf32, #tpu.memory_space<vmem>>) attributes {dimension_semantics = [#tpu.dimension_semantics<parallel>, #tpu.dimension_semantics<arbitrary>], iteration_bounds = array<i64: 2, 1>, scalar_prefetch = 0 : i64, scratch_operands = 1 : i64, tpu.core_type = #tpu.core_type<tc>, window_params = [{transform_indices = @transform_0, window_bounds = array<i64: 8, 128>}, {transform_indices = @transform_1, window_bounds = array<i64: 128, 128>}, {transform_indices = @transform_2, window_bounds = array<i64: 1, 128>}, {transform_indices = @transform_3, window_bounds = array<i64: 128, 128>}, {pipeline_mode = #tpu.pipeline_mode<synchronous>, transform_indices = @transform_4, window_bounds = array<i64: 1, 128>}, {transform_indices = @transform_5, window_bounds = array<i64: 8, 128>}]} {
    %c0 = arith.constant 0 : index
    %c0_0 = arith.constant 0 : index
    %0 = vector.load %arg2[%c0, %c0_0] : memref<8x128xf32, #tpu.memory_space<vmem>>, vector<8x128xf32>
    %c0_1 = arith.constant 0 : index
    %c0_2 = arith.constant 0 : index
    %1 = vector.load %arg3[%c0_1, %c0_2] : memref<128x128xf32, #tpu.memory_space<vmem>>, vector<128x128xf32>
    %cst = arith.constant dense<0.000000e+00> : vector<8x128xf32>
    %2 = tpu.matmul %0, %1, %cst {dimension_numbers = #tpu.dot_dimension_numbers<[1], [0], [0], [1], [0, 0, 1, 1], [], []>} : vector<8x128xf32>, vector<128x128xf32>, vector<8x128xf32> -> vector<8x128xf32>
    %c0_3 = arith.constant 0 : index
    %c0_4 = arith.constant 0 : index
    %3 = vector.load %arg4[%c0_3, %c0_4] : memref<1x128xf32, #tpu.memory_space<vmem>>, vector<1x128xf32>
    %4 = vector.broadcast %3 : vector<1x128xf32> to vector<8x128xf32>
    %5 = arith.addf %2, %4 : vector<8x128xf32>
    %cst_5 = arith.constant 0.797884583 : f32
    %6 = vector.broadcast %cst_5 : f32 to vector<8x128xf32>
    %7 = arith.mulf %6, %5 : vector<8x128xf32>
    %cst_6 = arith.constant 4.471500e-02 : f32
    %8 = vector.broadcast %cst_6 : f32 to vector<8x128xf32>
    %9 = arith.mulf %8, %5 : vector<8x128xf32>
    %10 = arith.mulf %9, %5 : vector<8x128xf32>
    %cst_7 = arith.constant 1.000000e+00 : f32
    %11 = vector.broadcast %cst_7 : f32 to vector<8x128xf32>
    %12 = arith.addf %11, %10 : vector<8x128xf32>
    %13 = arith.mulf %7, %12 : vector<8x128xf32>
    %14 = math.tanh %13 : vector<8x128xf32>
    %cst_8 = arith.constant 1.000000e+00 : f32
    %15 = vector.broadcast %cst_8 : f32 to vector<8x128xf32>
    %16 = arith.addf %15, %14 : vector<8x128xf32>
    %17 = arith.mulf %5, %16 : vector<8x128xf32>
    %c0_9 = arith.constant 0 : index
    %c0_10 = arith.constant 0 : index
    %18 = vector.load %arg5[%c0_9, %c0_10] : memref<128x128xf32, #tpu.memory_space<vmem>>, vector<128x128xf32>
    %cst_11 = arith.constant dense<0.000000e+00> : vector<8x128xf32>
    %19 = tpu.matmul %17, %18, %cst_11 {dimension_numbers = #tpu.dot_dimension_numbers<[1], [0], [0], [1], [0, 0, 1, 1], [], []>} : vector<8x128xf32>, vector<128x128xf32>, vector<8x128xf32> -> vector<8x128xf32>
    %c0_i32 = arith.constant 0 : i32
    %20 = arith.cmpi eq, %arg1, %c0_i32 : i32
    %21 = arith.extui %20 : i1 to i32
    %c0_i32_12 = arith.constant 0 : i32
    %22 = arith.cmpi ne, %21, %c0_i32_12 : i32
    scf.if %22 {
      %c0_17 = arith.constant 0 : index
      %c0_18 = arith.constant 0 : index
      %29 = vector.load %arg6[%c0_17, %c0_18] : memref<1x128xf32, #tpu.memory_space<vmem>>, vector<1x128xf32>
      %30 = vector.broadcast %29 : vector<1x128xf32> to vector<8x128xf32>
      %31 = arith.addf %19, %30 : vector<8x128xf32>
      %c0_19 = arith.constant 0 : index
      %c0_20 = arith.constant 0 : index
      %32 = vector.load %arg8[%c0_19, %c0_20] : memref<8x128xf32, #tpu.memory_space<vmem>>, vector<8x128xf32>
      tpu.vector_store %arg8[%c0_19, %c0_20], %31 {strides = array<i32>} : memref<8x128xf32, #tpu.memory_space<vmem>>, vector<8x128xf32>,
    } else {
    }
    %c0_i32_13 = arith.constant 0 : i32
    %23 = arith.cmpi ne, %arg1, %c0_i32_13 : i32
    %24 = arith.extui %23 : i1 to i32
    %c0_i32_14 = arith.constant 0 : i32
    %25 = arith.cmpi ne, %24, %c0_i32_14 : i32
    scf.if %25 {
      %c0_17 = arith.constant 0 : index
      %c0_18 = arith.constant 0 : index
      %29 = vector.load %arg8[%c0_17, %c0_18] : memref<8x128xf32, #tpu.memory_space<vmem>>, vector<8x128xf32>
      %30 = arith.addf %29, %19 : vector<8x128xf32>
      %c0_19 = arith.constant 0 : index
      %c0_20 = arith.constant 0 : index
      %31 = vector.load %arg8[%c0_19, %c0_20] : memref<8x128xf32, #tpu.memory_space<vmem>>, vector<8x128xf32>
      tpu.vector_store %arg8[%c0_19, %c0_20], %30 {strides = array<i32>} : memref<8x128xf32, #tpu.memory_space<vmem>>, vector<8x128xf32>,
    } else {
    }
    %c0_i32_15 = arith.constant 0 : i32
    %26 = arith.cmpi eq, %arg1, %c0_i32_15 : i32
    %27 = arith.extui %26 : i1 to i32
    %c0_i32_16 = arith.constant 0 : i32
    %28 = arith.cmpi ne, %27, %c0_i32_16 : i32
    scf.if %28 {
      %c0_17 = arith.constant 0 : index
      %c0_18 = arith.constant 0 : index
      %29 = vector.load %arg8[%c0_17, %c0_18] : memref<8x128xf32, #tpu.memory_space<vmem>>, vector<8x128xf32>
      %c0_19 = arith.constant 0 : index
      %c0_20 = arith.constant 0 : index
      %30 = vector.load %arg7[%c0_19, %c0_20] : memref<8x128xf32, #tpu.memory_space<vmem>>, vector<8x128xf32>
      tpu.vector_store %arg7[%c0_19, %c0_20], %29 {strides = array<i32>} : memref<8x128xf32, #tpu.memory_space<vmem>>, vector<8x128xf32>,
    } else {
    }
    return
  }
  func.func @transform_0(%arg0: i32, %arg1: i32) -> (i32, i32) {
    %c0_i32 = arith.constant 0 : i32
    %c0_i32_0 = arith.constant 0 : i32
    return %arg0, %c0_i32 : i32, i32
  }
  func.func @transform_1(%arg0: i32, %arg1: i32) -> (i32, i32) {
    %c0_i32 = arith.constant 0 : i32
    %c0_i32_0 = arith.constant 0 : i32
    return %c0_i32, %arg1 : i32, i32
  }
  func.func @transform_2(%arg0: i32, %arg1: i32) -> (i32, i32) {
    %c0_i32 = arith.constant 0 : i32
    %c0_i32_0 = arith.constant 0 : i32
    return %c0_i32, %arg1 : i32, i32
  }
  func.func @transform_3(%arg0: i32, %arg1: i32) -> (i32, i32) {
    %c0_i32 = arith.constant 0 : i32
    %c0_i32_0 = arith.constant 0 : i32
    return %arg1, %c0_i32 : i32, i32
  }
  func.func @transform_4(%arg0: i32, %arg1: i32) -> (i32, i32) {
    %c0_i32 = arith.constant 0 : i32
    %c0_i32_0 = arith.constant 0 : i32
    %c0_i32_1 = arith.constant 0 : i32
    return %c0_i32, %c0_i32_0 : i32, i32
  }
  func.func @transform_5(%arg0: i32, %arg1: i32) -> (i32, i32) {
    %c0_i32 = arith.constant 0 : i32
    %c0_i32_0 = arith.constant 0 : i32
    return %arg0, %c0_i32 : i32, i32
  }
}

</mosaic_0001>

<bundles_post_ra>
// kernel: tpu_custom_call.1
= control target key start
LH: loop header
LB: loop body
LE: loop exit
PB: predicated region body
PF: predicated region fallthrough
CT: control target
= control target key end

     0   :  { %10 = vsyncpa [#allocation4], 0  ;;  %s1405_s0 = inlined_call_operand.hbm [shape: f32[16,128], index: 0, kind: input, shape index: {}]   ;;  %s1406_s1 = inlined_call_operand.hbm [shape: f32[128,128], index: 1, kind: input, shape index: {}]   ;;  %s1407_s2 = inlined_call_operand.vmem [shape: f32[1,128], index: 2, kind: input, shape index: {}]   ;;  %s1408_s3 = inlined_call_operand.hbm [shape: f32[128,128], index: 3, kind: input, shape index: {}]   ;;  %s1409_s4 = inlined_call_operand.vmem [shape: f32[1,128], index: 4, kind: input, shape index: {}]   ;;  %s1410_s5 = inlined_call_operand.hbm [shape: f32[16,128], index: 5, kind: output, shape index: {}]  }
   0x1   :  { %12 = vsyncpa [#allocation4 + $0x1], 0 }
   0x2   :  { %13 = vsyncpa [#allocation7], 0 }
   0x3   :  { %14 = vsyncpa [#allocation5], 0 }
   0x4   :  { %16 = vsyncpa [#allocation5 + $0x1], 0  ;;  %s1126_s18 = smov 0   ;;  %s1128_s19 = smov 0  }
   0x5   :  { %s1130_s20 = smov 0   ;;  %s1132_s21 = smov 0  }
   0x6   :  { %s1134_s22 = smov 0   ;;  %s1136_s23 = smov 0  }
   0x7 LB: > { %s651_s24 = sadd.s32 4294967295, %s1085_s23   ;;  %s652_s25 = sadd.s32 4294967294, %s1085_s23   ;;  %s1085_s23 = sphi %s1136_s23, %s22_s23   ;;  %s1081_s22 = sphi %s1134_s22, %s1432_s22   ;;  %s1077_s21 = sphi %s1132_s21, %s1431_s21   ;;  %s1073_s20 = sphi %s1130_s20, %s1430_s20   ;;  %s1069_s19 = sphi %s1128_s19, %s1429_s19   ;;  %s1065_s18 = sphi %s1126_s18, %s1428_s18  }
   0x8   : > { %p54_p0 = scmp.ne.s32.totalorder %s1069_s19, %s1065_s18  ;;  %p1160_p1 = scmp.eq.s32.totalorder %s651_s24, 0 }
   0x9   : > { %p1164_p2 = scmp.eq.s32.totalorder %s651_s24, 1  ;;  %p183_p3 = scmp.eq.s32.totalorder %s652_s25, 1 }
   0xa   : > { %s1415_s26 = scalar_select %p1160_p1, 1, 0 }
   0xb   : > { %p1170_p4 = por %p1160_p1, %p54_p0  ;;  %p653_p5 = scmp.ge.s32.totalorder %s1085_s23, 1 }
   0xc   : > { %p1175_p6 = por %p183_p3, %p54_p0  ;;  %p190_p7 = scmp.lt.s32.totalorder %s1085_s23, 3 }
   0xd   : > { %s1417_s28 = scalar_select %p1170_p4, 1, 0 }
   0xe   : > { %s1418_s29 = scalar_select %p1175_p6, 1, 0 }
   0xf   : > { %p1180_p8 = pnand %p653_p5, %p190_p7  ;;  %s1087_s6 = smov [#allocation6]  }
  0x10   : > { %s204_s7 = sshll.u32 %s1087_s6, 4  ;;  %s1088_s9 = smov [#allocation8]   ;;  %s1184_s7 = int_to_ptr.vmem [resolvable:$true] %s204_s7 }
  0x11   : > { %p835_p9 = pneg %p1180_p8  ;;  %s226_s10 = sshll.u32 %s1088_s9, 4  ;;  %s1195_s10 = int_to_ptr.vmem [resolvable:$true] %s226_s10 }
  0x12   : > { %s913_s13 = scalar_lea.hbm %s1406_s1, 2048 }
  0x13   : > { %p1191_p11 = pnand %p835_p9, %p1160_p1  ;;  %p914_p12 = scmp.ne.s32.totalorder %s1406_s1, %s913_s13 }
  0x14   : > { %p920_p5 = scmp.lt.u32.totalorder %s913_s13, %s1406_s1 }
  0x15   : > { %p915_p13 = pneg %p1191_p11 }
  0x17   : > { %p916_p0 = pnand %p915_p13, %p914_p12 }
  0x19   : > { %p917_p3 = pneg %p916_p0 }
  0x1b   : > { %p922_p7 = pnand %p920_p5, %p917_p3 }
  0x1d   : > { %925 = shalt.err (!%p922_p7)
}
  0x1e   : > { %s926_s24 = scalar_lea.vmem %s1184_s7, 2048  ;;  %p934_p1 = scmp.lt.s32.totalorder %s1184_s7, %s1184_s7 }
  0x1f   : > { %p927_p9 = scmp.ne.s32.totalorder %s1184_s7, %s926_s24  ;;  %p935_p12 = scmp.lt.s32.totalorder %s926_s24, %s926_s24 }
  0x21   : > { %p929_p10 = pnand %p927_p9, %p915_p13  ;;  %p936_p0 = por %p935_p12, %p934_p1 }
  0x23   : > { %p930_p6 = pneg %p929_p10 }
  0x25   : > { %p937_p4 = pnand %p936_p0, %p930_p6 }
  0x27   : > { %940 = shalt.err (!%p937_p4)
}
  0x28   : > { %s1089_s25 = smov 128   ;;  %s1090_s6 = smov 8  }
  0x29   : > { %838 = dma.hbm_to_vmem [thread:$0]  (!%p1191_p11), %s1406_s1, 2048, %s1184_s7, [#allocation7], %s1089_s25, %s1089_s25, %s1090_s6  }
  0x2a   : > { %s941_s14 = scalar_lea.hbm %s1408_s3, 2048 }
  0x2b   : > { %p942_p1 = scmp.ne.s32.totalorder %s1408_s3, %s941_s14  ;;  %p948_p10 = scmp.lt.u32.totalorder %s941_s14, %s1408_s3 }
  0x2d   : > { %p944_p4 = pnand %p942_p1, %p915_p13 }
  0x2f   : > { %p945_p6 = pneg %p944_p4 }
  0x31   : > { %p950_p3 = pnand %p948_p10, %p945_p6 }
  0x33   : > { %953 = shalt.err (!%p950_p3)
}
  0x34   : > { %s954_s7 = scalar_lea.vmem %s1195_s10, 2048  ;;  %p962_p12 = scmp.lt.s32.totalorder %s1195_s10, %s1195_s10 }
  0x35   : > { %p955_p5 = scmp.ne.s32.totalorder %s1195_s10, %s954_s7  ;;  %p963_p0 = scmp.lt.s32.totalorder %s954_s7, %s954_s7 }
  0x37   : > { %p957_p7 = pnand %p955_p5, %p915_p13  ;;  %p964_p1 = por %p963_p0, %p962_p12 }
  0x39   : > { %p958_p9 = pneg %p957_p7 }
  0x3b   : > { %p965_p4 = pnand %p964_p1, %p958_p9 }
  0x3d   : > { %968 = shalt.err (!%p965_p4)
}
  0x3e   : > { %841 = dma.hbm_to_vmem [thread:$0]  (!%p1191_p11), %s1408_s3, 2048, %s1195_s10, [#allocation7], %s1089_s25, %s1089_s25, %s1090_s6  }
  0x3f   : > { %s34_s12 = sadd.s32 1, %s1081_s22  ;;  %s41_s13 = sadd.s32 1, %s1073_s20 }
  0x40   : > { %p36_p13 = scmp.ge.s32.totalorder %s34_s12, 2  ;;  %p48_p6 = scmp.ne.s32.totalorder %s1073_s20, %s1069_s19 }
  0x41   : > { %p49_p10 = scmp.eq.s32.totalorder %s1085_s23, 0  ;;  %p852_p3 = scmp.lt.s32.totalorder %s1085_s23, 2 }
  0x42   : > { %s1434_s12 = smov (%p36_p13, %s34_s12), 0  ;;  %p1259_p7 = por %p1164_p2, %p48_p6 }
  0x43   : > { %p50_p5 = por %p49_p10, %p48_p6  ;;  %s38_s14 = ssub.s32 %s1081_s22, %s1434_s12 }
  0x44   : > { %s1421_s8 = scalar_select %p1259_p7, 1, 0 }
  0x45   : > { %s243_s15 = sand.u32 1, %s1073_s20   ;;  %p39_p9 = scmp.eq.s32.totalorder %s38_s14, 0 }
  0x46   : > { %s658_s10 = sshll.u32 %s243_s15, 3  ;;  %s659_s25 = sshll.u32 %s1081_s22, 7 }
  0x47   : > { %s1268_s6 = scalar_select %p39_p9, %s1073_s20, %s41_s13  }
  0x48   : > { %s1273_s24 = scalar_lea.hbm %s1405_s0, %s659_s25  ;;  %s247_s27 = scalar_lea.vmem [#allocation3], %s658_s10 }
  0x49   : > { %s254_s7 = sshll.u32 %s247_s27, 4  ;;  %p1277_p2 = pnand %p852_p3, %p50_p5  ;;  %s1281_s7 = int_to_ptr.vmem [resolvable:$true] %s254_s7 }
  0x4a   : > { %s244_s11 = scalar_lea.sflag [#allocation4], %s243_s15  ;;  %s969_s13 = scalar_lea.hbm %s1273_s24, 128 }
  0x4b   : > { %p970_p11 = scmp.ne.s32.totalorder %s1273_s24, %s969_s13  ;;  %p971_p12 = pneg %p1277_p2 }
  0x4c   : > { %s974_s25 = scalar_lea.hbm %s1405_s0, 256  ;;  %p975_p4 = scmp.lt.u32.totalorder %s1273_s24, %s1405_s0 }
  0x4d   : > { %p972_p0 = pnand %p971_p12, %p970_p11  ;;  %p976_p13 = scmp.lt.u32.totalorder %s974_s25, %s969_s13 }
  0x4e   : > { %p978_p10 = scmp.lt.u32.totalorder %s969_s13, %s1273_s24 }
  0x4f   : > { %p973_p1 = pneg %p972_p0  ;;  %p977_p6 = por %p976_p13, %p975_p4 }
  0x51   : > { %p979_p3 = por %p978_p10, %p977_p6 }
  0x53   : > { %p980_p5 = pnand %p979_p3, %p973_p1 }
  0x55   : > { %983 = shalt.err (!%p980_p5)
}
  0x56   : > { %s984_s15 = scalar_lea.vmem %s1281_s7, 128  ;;  %s1091_s27 = smov [#allocation3]  }
  0x57   : > { %p985_p9 = scmp.ne.s32.totalorder %s1281_s7, %s984_s15  ;;  %s989_s14 = sshll.u32 %s1091_s27, 4  ;;  %s990_s14 = int_to_ptr.vmem [resolvable:$false] %s989_s14 }
  0x58   : > { %s991_s10 = scalar_lea.vmem %s990_s14, 256  ;;  %p992_p7 = scmp.lt.s32.totalorder %s1281_s7, %s990_s14 }
  0x59   : > { %p987_p11 = pnand %p985_p9, %p971_p12  ;;  %p993_p4 = scmp.lt.s32.totalorder %s991_s10, %s984_s15 }
  0x5b   : > { %p988_p0 = pneg %p987_p11  ;;  %p994_p13 = por %p993_p4, %p992_p7 }
  0x5d   : > { %p995_p6 = pnand %p994_p13, %p988_p0 }
  0x5f   : > { %998 = shalt.err (!%p995_p6)
}
  0x60   : > { %845 = dma.hbm_to_vmem [thread:$0]  (!%p1277_p2), %s1273_s24, 128, %s1281_s7, %s244_s11  }
  0x61   : > { %263 = sbr.rel (%p1180_p8) target bundleno = 608 (0x260), region = 40  ;;  %s1311_s13 = sand.u32 (!%p1180_p8), 1, %s1069_s19  }
  0x62   : > { %s661_s25 = sshll.u32 (!%p1180_p8), %s1311_s13, 3  ;;  %s266_s16 = scalar_lea.sflag (!%p1180_p8), [#allocation4], %s1311_s13 }
  0x63   : > { %s1317_s17 = scalar_lea.vmem (!%p1180_p8), [#allocation3], %s661_s25  ;;  %p1423_p7 = scmp.ne.s32.totalorder (!%p1180_p8), %s1417_s28, 0 }
  0x68   : > { %1052 = dma.done.wait (%p1423_p7), %s266_s16, 128  }
  0x69   : > { %1054 = vsyncadd (%p1423_p7), %s266_s16, 4294967168  ;;  %p1424_p2 = scmp.ne.s32.totalorder %s1415_s26, 0 }
  0x6b   : > { %1056 = dma.done.wait (%p1424_p2), [#allocation7], 4096  }
  0x6c   : > { %1058 = vsyncadd (%p1424_p2), [#allocation7], 4294963200  ;;  %v1092_v0 = vmov 0.0|0.0   ;;  %vm1093_vm0 = vmmov 0   ;;  %v1094_v1 = vmov 0.0   ;;  %v312_v2 = vld [vmem:[#allocation6] sm:$0xff] }
  0x6d   : > { %775 = vmatprep.subr.bf16.mxu0 %v1092_v0  ;;  %737 = vmatprep.mubr.msk.f32.mxu0 %vm1093_vm0, %v1094_v1  ;;  %v313_v3 = vld [vmem:[#allocation6 + $0x8] sm:$0xff]  ;;  %v314_v4 = vld [vmem:[#allocation6 + $0x10] sm:$0xff]  ;;  %v315_v6 = vld [vmem:[#allocation6 + $0x18] sm:$0xff]  ;;  %s668_s7 = sshll.u32 %s1077_s21, 7  ;;  %s306_s9 = scalar_lea.vmem [#allocation9], %s661_s25 }
  0x6e   : > { %799 = vmatprep.subr.bf16.mxu1 %v1092_v0  ;;  %772 = vmatprep.mubr.msk.f32.mxu1 %vm1093_vm0, %v1094_v1  ;;  %v776_v5 = vpack.c.bf16 %v313_v3, %v312_v2  ;;  %v779_v7 = vpack.c.bf16 %v315_v6, %v314_v4  ;;  %v316_v8 = vld [vmem:[#allocation6 + $0x20] sm:$0xff]  ;;  %v317_v9 = vld [vmem:[#allocation6 + $0x28] sm:$0xff]  ;;  %v415_v12 = vld [vmem:[#allocation8 + $0x10] sm:$0xff]  ;;  %s538_s11 = sshll.u32 %s306_s9, 4  ;;  %s1356_s14 = scalar_lea.hbm %s1410_s5, %s668_s7  ;;  %s1358_s11 = int_to_ptr.vmem [resolvable:$true] %s538_s11 }
  0x6f   : > { %v413_v10 = vld [vmem:[#allocation8] sm:$0xff]  ;;  %v414_v11 = vld [vmem:[#allocation8 + $0x8] sm:$0xff]  ;;  %v416_v13 = vld [vmem:[#allocation8 + $0x18] sm:$0xff]  ;;  %v782_v14 = vpack.c.bf16 %v317_v9, %v316_v8  ;;  %s525_s10 = scalar_lea.sflag [#allocation5], %s1311_s13  ;;  %s999_s16 = scalar_lea.vmem %s1358_s11, 128 }
  0x70   : > { %777 = vmatpush3.bf16.msra.mxu0 %v776_v5  ;;  %v800_v15 = vpack.c.bf16 %v414_v11, %v413_v10  ;;  %v318_v16 = vld [vmem:[#allocation6 + $0x30] sm:$0xff]  ;;  %v319_v17 = vld [vmem:[#allocation6 + $0x38] sm:$0xff]  ;;  %v803_v18 = vpack.c.bf16 %v416_v13, %v415_v12  ;;  %v320_v20 = vld [vmem:[#allocation6 + $0x40] sm:$0xff]  ;;  %p1000_p8 = scmp.ne.s32.totalorder %s1358_s11, %s999_s16  ;;  %p1425_p12 = scmp.ne.s32.totalorder %s1421_s8, 0 }
  0x71   : > { %778 = vmatprep.subr.bf16.mxu0 %v1092_v0  ;;  %v785_v19 = vpack.c.bf16 %v319_v17, %v318_v16  ;;  %v321_v21 = vld [vmem:[#allocation6 + $0x48] sm:$0xff]  ;;  %v322_v23 = vld [vmem:[#allocation6 + $0x50] sm:$0xff]  ;;  %v323_v24 = vld [vmem:[#allocation6 + $0x58] sm:$0xff]  ;;  %s1095_s21 = smov [#allocation9]  }
  0x72   : > { %801 = vmatpush3.bf16.msra.mxu1 %v800_v15  ;;  %v788_v22 = vpack.c.bf16 %v321_v21, %v320_v20  ;;  %v791_v25 = vpack.c.bf16 %v323_v24, %v322_v23  ;;  %v324_v26 = vld [vmem:[#allocation6 + $0x60] sm:$0xff]  ;;  %v325_v27 = vld [vmem:[#allocation6 + $0x68] sm:$0xff]  ;;  %v326_v29 = vld [vmem:[#allocation6 + $0x70] sm:$0xff]  ;;  %p1001_p1 = pnand %p1000_p8, %p1425_p12  ;;  %s1003_s25 = sshll.u32 %s1095_s21, 4  ;;  %s1004_s25 = int_to_ptr.vmem [resolvable:$false] %s1003_s25 }
  0x73   : > { %802 = vmatprep.subr.bf16.mxu1 %v1092_v0  ;;  %v794_v28 = vpack.c.bf16 %v325_v27, %v324_v26  ;;  %v327_v30 = vld [vmem:[#allocation6 + $0x78] sm:$0xff]  ;;  %v417_v33 = vld [vmem:[#allocation8 + $0x20] sm:$0xff]  ;;  %v418_v34 = vld [vmem:[#allocation8 + $0x28] sm:$0xff]  ;;  %p1006_p3 = scmp.lt.s32.totalorder %s1358_s11, %s1004_s25 }
  0x74   : > { %780 = vmatpush3.bf16.msra.mxu0 %v779_v7  ;;  %v797_v31 = vpack.c.bf16 %v327_v30, %v326_v29  ;;  %v311_v32 = vld [vmem:[%s1317_s17] sm:$0xff]  ;;  %v806_v35 = vpack.c.bf16 %v418_v34, %v417_v33  ;;  %v421_v39 = vld [vmem:[#allocation8 + $0x40] sm:$0xff]  ;;  %v422_v40 = vld [vmem:[#allocation8 + $0x48] sm:$0xff]  ;;  %p1002_p10 = pneg %p1001_p1  ;;  %s1005_s17 = scalar_lea.vmem %s1004_s25, 256 }
  0x75   : > { %781 = vmatprep.subr.bf16.mxu0 %v1092_v0  ;;  %v419_v36 = vld [vmem:[#allocation8 + $0x30] sm:$0xff]  ;;  %v420_v37 = vld [vmem:[#allocation8 + $0x38] sm:$0xff]  ;;  %v812_v41 = vpack.c.bf16 %v422_v40, %v421_v39  ;;  %v425_v45 = vld [vmem:[#allocation8 + $0x60] sm:$0xff]  ;;  %p1007_p5 = scmp.lt.s32.totalorder %s1005_s17, %s999_s16 }
  0x76   : > { %804 = vmatpush3.bf16.msra.mxu1 %v803_v18  ;;  %v809_v38 = vpack.c.bf16 %v420_v37, %v419_v36  ;;  %v423_v42 = vld [vmem:[#allocation8 + $0x50] sm:$0xff]  ;;  %v424_v43 = vld [vmem:[#allocation8 + $0x58] sm:$0xff]  ;;  %v426_v46 = vld [vmem:[#allocation8 + $0x68] sm:$0xff] }
  0x77   : > { %805 = vmatprep.subr.bf16.mxu1 %v1092_v0  ;;  %v815_v44 = vpack.c.bf16 %v424_v43, %v423_v42  ;;  %v818_v47 = vpack.c.bf16 %v426_v46, %v425_v45  ;;  %v427_v48 = vld [vmem:[#allocation8 + $0x70] sm:$0xff]  ;;  %v428_v49 = vld [vmem:[#allocation8 + $0x78] sm:$0xff]  ;;  %p1008_p9 = por %p1007_p5, %p1006_p3 }
  0x78   : > { %783 = vmatpush3.bf16.msra.mxu0 %v782_v14  ;;  %v821_v50 = vpack.c.bf16 %v428_v49, %v427_v48  ;;  %v665_v51 = vld [vmem:[%s1407_s2] ss:$0 sm:$0xff] }
  0x79   : > { %784 = vmatprep.subr.bf16.mxu0 %v1092_v0  ;;  %v666_v63 = vld [vmem:[%s1409_s4] ss:$0 sm:$0xff]  ;;  %p1009_p11 = pnand %p1008_p9, %p1002_p10 }
  0x7a   : > { %807 = vmatpush3.bf16.msra.mxu1 %v806_v35 }
  0x7b   : > { %808 = vmatprep.subr.bf16.mxu1 %v1092_v0 }
  0x7c   : > { %786 = vmatpush3.bf16.msra.mxu0 %v785_v19 }
  0x7d   : > { %787 = vmatprep.subr.bf16.mxu0 %v1092_v0 }
  0x7e   : > { %810 = vmatpush3.bf16.msra.mxu1 %v809_v38 }
  0x7f   : > { %811 = vmatprep.subr.bf16.mxu1 %v1092_v0 }
  0x80   : > { %789 = vmatpush3.bf16.msra.mxu0 %v788_v22 }
  0x81   : > { %790 = vmatprep.subr.bf16.mxu0 %v1092_v0 }
  0x82   : > { %813 = vmatpush3.bf16.msra.mxu1 %v812_v41 }
  0x83   : > { %814 = vmatprep.subr.bf16.mxu1 %v1092_v0 }
  0x84   : > { %792 = vmatpush3.bf16.msra.mxu0 %v791_v25 }
  0x85   : > { %793 = vmatprep.subr.bf16.mxu0 %v1092_v0 }
  0x86   : > { %816 = vmatpush3.bf16.msra.mxu1 %v815_v44 }
  0x87   : > { %817 = vmatprep.subr.bf16.mxu1 %v1092_v0 }
  0x88   : > { %795 = vmatpush3.bf16.msra.mxu0 %v794_v28 }
  0x89   : > { %796 = vmatprep.subr.bf16.mxu0 %v1092_v0 }
  0x8a   : > { %819 = vmatpush3.bf16.msra.mxu1 %v818_v47 }
  0x8b   : > { %820 = vmatprep.subr.bf16.mxu1 %v1092_v0 }
  0x8c   : > { %798 = vmatpush3.bf16.msra.mxu0 %v797_v31 }
  0x8e   : > { %822 = vmatpush3.bf16.msra.mxu1 %v821_v50 }
  0x8f   : > { %738 = vmatmul.mubr.f32.vlgmr.msra.gmra.mrb[0].mxu0 %v311_v32 }
 0x162   : > { %v401_v52 = vpop.f32.mrb[0].mxu0 }
 0x163   : > { %v402_v53 = vadd.f32 %v665_v51, %v401_v52  ;;  %v739_v54 = vpop.f32.mrb[1].mxu0 }
 0x165   : > { %v406_v55 = vmul.f32 0.044715, %v402_v53  ;;  %v405_v57 = vmul.f32 0.7978846, %v402_v53 }
 0x167   : > { %v407_v56 = vmul.f32 %v406_v55, %v402_v53 }
 0x169   : > { %v408_v58 = vadd.f32 1.0, %v407_v56 }
 0x16b   : > { %v409_v59 = vmul.f32 %v408_v58, %v405_v57 }
 0x16d   : > { %911 = vtanh.f32 %v409_v59 }
 0x177   : > { %v912_v60 = vpop.eup %911 }
 0x178   : > { %v411_v61 = vadd.f32 1.0, %v912_v60 }
 0x17a   : > { %v412_v62 = vmul.f32 %v411_v61, %v402_v53 }
 0x17c   : > { %773 = vmatmul.mubr.f32.vlgmr.msra.gmra.mrb[0].mxu1 %v412_v62 }
 0x24f   : > { %v495_v0 = vpop.f32.mrb[0].mxu1 }
 0x250   : > { %v510_v1 = vadd.f32 %v666_v63, %v495_v0  ;;  %v774_v2 = vpop.f32.mrb[1].mxu1 }
 0x252   : > { %523 = vst [vmem:[%s306_s9] sm:$0xff] %v510_v1 }
 0x253   : > { %1012 = shalt.err (!%p1009_p11)
}
 0x254   : > { %s1013_s13 = scalar_lea.hbm %s1356_s14, 128  ;;  %s1017_s30 = scalar_lea.hbm %s1410_s5, 256 }
 0x255   : > { %p1014_p0 = scmp.ne.s32.totalorder %s1356_s14, %s1013_s13  ;;  %p1018_p6 = scmp.lt.u32.totalorder %s1356_s14, %s1410_s5 }
 0x256   : > { %p1019_p7 = scmp.lt.u32.totalorder %s1017_s30, %s1013_s13  ;;  %p1021_p8 = scmp.lt.u32.totalorder %s1013_s13, %s1356_s14 }
 0x257   : > { %p1015_p4 = pnand %p1014_p0, %p1425_p12 }
 0x258   : > { %p1020_p2 = por %p1019_p7, %p1018_p6 }
 0x259   : > { %p1016_p13 = pneg %p1015_p4 }
 0x25a   : > { %p1022_p1 = por %p1021_p8, %p1020_p2 }
 0x25c   : > { %p1023_p10 = pnand %p1022_p1, %p1016_p13 }
 0x25e   : > { %1026 = shalt.err (!%p1023_p10)
}
 0x25f   : > { %833 = dma.vmem_to_hbm [thread:$0]  (%p1425_p12), %s1358_s11, 128, %s1356_s14, %s525_s10  }
 0x260 PF: > { %s550_s9 = sand.u32 1, %s1065_s18   ;;  %p1426_p3 = scmp.ne.s32.totalorder %s1418_s29, 0 }
 0x261   : > { %p1427_p5 = scmp.ge.s32.totalorder %s1085_s23, 2  ;;  %s551_s15 = scalar_lea.sflag [#allocation5], %s550_s9 }
 0x263   : > { %p847_p9 = pnand %p1427_p5, %p1426_p3 }
 0x265   : > { %1060 = dma.done.wait (!%p847_p9), %s551_s15, 128  }
 0x266   : > { %1062 = vsyncadd (!%p847_p9), %s551_s15, 4294967168  ;;  %s22_s23 = sadd.s32 1, %s1085_s23   ;;  %s1428_s18 = smov %s1069_s19 }
 0x267   : > { %p19_p11 = scmp.ge.s32.totalorder %s22_s23, 4   ;;  %s1429_s19 = smov %s1073_s20 }
 0x268   : > { %s1430_s20 = smov %s1268_s6  ;;  %s1431_s21 = smov %s1081_s22 }
 0x269   : > { %s1432_s22 = smov %s1434_s12  ;;  %21 = sbr.rel (!%p19_p11) target bundleno = 7 (0x7), region = 110 }
 0x270   :  { %556 = vsyncpa [#allocation4], 1 }
 0x271   :  { %558 = vsyncpa [#allocation4 + $0x1], 1 }
 0x272   :  { %559 = vsyncpa [#allocation7], 1 }
 0x273   :  { %560 = vsyncpa [#allocation5], 1 }
 0x274   :  { %562 = vsyncpa [#allocation5 + $0x1], 1 }

</bundles_post_ra>
